<compile_context>
chip_gen: v7x
topology: tpu7x:2x2x1
jax: 0.10.0
libtpu: 0.0.40
codegen_flags: <defaults>
</compile_context>

<pallas_src>
import jax
import jax.numpy as jnp
from jax.experimental import pallas as pl
from jax.experimental.pallas import tpu as pltpu

LANE = 128          # lane width: pad feature dims to this for dense stores
MAX_BATCH_TILE = 256  # MXU-native tile on v6e/v7x, multiple of 128 for v5e


def _round_up(n, m):
    return ((n + m - 1) // m) * m


def pioneer_kernel(x_ref, w1_ref, b1_ref, w2_ref, b2_ref, out_ref):
    # Layer 1: tanh(x @ W1 + b1)   (f32 accumulate on the MXU, tanh on the EUP)
    h = jnp.tanh(
        jnp.dot(x_ref[...], w1_ref[...], preferred_element_type=jnp.float32)
        + b1_ref[...]
    )
    # Layer 2: tanh(h @ W2 + b2)
    o = jnp.tanh(
        jnp.dot(h, w2_ref[...], preferred_element_type=jnp.float32)
        + b2_ref[...]
    )
    out_ref[...] = o.astype(out_ref.dtype)


def pioneer_forward(x, w1, b1, w2, b2):
    """Forward pass of PioneerNN: tanh(tanh(x @ w1 + b1) @ w2 + b2).

    x  : (B, input_size)  float32
    w1 : (input_size, hidden_size)  float32   (transpose of torch hidden.weight)
    b1 : (hidden_size,) or (1, hidden_size)   float32
    w2 : (hidden_size, output_size) float32   (transpose of torch output.weight)
    b2 : (output_size,) or (1, output_size)   float32
    returns (B, output_size) float32
    """
    B, I = x.shape
    H = w1.shape[1]
    O = w2.shape[1]

    b1 = jnp.asarray(b1).reshape(1, -1)
    b2 = jnp.asarray(b2).reshape(1, -1)

    # --- lane-dense padding of the feature dims (zero-padded, provably inert) ---
    H_pad = _round_up(H, LANE)
    O_pad = _round_up(O, LANE)
    w1p = jnp.zeros((I, H_pad), jnp.float32).at[:, :H].set(w1)
    b1p = jnp.zeros((1, H_pad), jnp.float32).at[:, :H].set(b1)
    w2p = jnp.zeros((H_pad, O_pad), jnp.float32).at[:H, :O].set(w2)
    b2p = jnp.zeros((1, O_pad), jnp.float32).at[:, :O].set(b2)

    # --- batch tiling: TB multiple of 8 (sublane), capped at MXU-native 256 ---
    TB = min(MAX_BATCH_TILE, _round_up(B, 8))
    B_pad = _round_up(B, TB)
    xp = x if B_pad == B else jnp.zeros((B_pad, I), jnp.float32).at[:B].set(x)

    grid = (B_pad // TB,)
    out_padded = pl.pallas_call(
        pioneer_kernel,
        out_shape=jax.ShapeDtypeStruct((B_pad, O_pad), jnp.float32),
        grid_spec=pl.GridSpec(
            grid=grid,
            in_specs=[
                # x tile: streamed / double-buffered across batch tiles.
                pl.BlockSpec((TB, I), lambda i: (i, 0)),
                # Weights & biases: same block every step -> stay VMEM-resident.
                pl.BlockSpec((I, H_pad), lambda i: (0, 0)),
                pl.BlockSpec((1, H_pad), lambda i: (0, 0)),
                pl.BlockSpec((H_pad, O_pad), lambda i: (0, 0)),
                pl.BlockSpec((1, O_pad), lambda i: (0, 0)),
            ],
            out_specs=pl.BlockSpec((TB, O_pad), lambda i: (i, 0)),
        ),
        compiler_params=pltpu.CompilerParams(
            dimension_semantics=("parallel",),
        ),
    )(xp, w1p, b1p, w2p, b2p)

    # Slice away batch and lane padding.
    return out_padded[:B, :O]


def init_pioneer_params(key, input_size, hidden_size, output_size):
    """Deterministic init matching PyTorch __init__:
    weights ~ U(-1, 1), biases = 0."""
    k1, k2 = jax.random.split(key)
    # PyTorch hidden.weight is (hidden, input); we store its transpose.
    w1 = jax.random.uniform(k1, (input_size, hidden_size), jnp.float32, -1.0, 1.0)
    b1 = jnp.zeros((1, hidden_size), jnp.float32)
    w2 = jax.random.uniform(k2, (hidden_size, output_size), jnp.float32, -1.0, 1.0)
    b2 = jnp.zeros((1, output_size), jnp.float32)
    return w1, b1, w2, b2


if __name__ == "__main__":
    # Small shapes consistent with the module's MLP forward.
    batch = 8
    input_size = 16
    hidden_size = 32
    output_size = 8

    key = jax.random.PRNGKey(0)
    kx, kp = jax.random.split(key)
    x = jax.random.uniform(kx, (batch, input_size), jnp.float32, -1.0, 1.0)
    w1, b1, w2, b2 = init_pioneer_params(kp, input_size, hidden_size, output_size)

    out = pioneer_forward(x, w1, b1, w2, b2)
    out = jax.block_until_ready(out)

    # Pure-JAX reference check (same semantics as the PyTorch forward).
    ref = jnp.tanh(jnp.tanh(x @ w1 + b1) @ w2 + b2)
    assert out.shape == (batch, output_size)
    assert jnp.allclose(out, ref, atol=1e-5, rtol=1e-5)

    # Also exercise a batch that is not tile-aligned to validate padding paths.
    x2 = jax.random.uniform(jax.random.PRNGKey(1), (37, input_size),
                            jnp.float32, -1.0, 1.0)
    out2 = jax.block_until_ready(pioneer_forward(x2, w1, b1, w2, b2))
    ref2 = jnp.tanh(jnp.tanh(x2 @ w1 + b1) @ w2 + b2)
    assert out2.shape == (37, output_size)
    assert jnp.allclose(out2, ref2, atol=1e-5, rtol=1e-5)

    print("KERNEL_OK")
</pallas_src>

<mosaic_0001>
module attributes {stable_mosaic.version = 11 : i64} {
  func.func @pioneer_kernel(%arg0: i32, %arg1: memref<8x16xf32, #tpu.memory_space<vmem>>, %arg2: memref<16x128xf32, #tpu.memory_space<vmem>>, %arg3: memref<1x128xf32, #tpu.memory_space<vmem>>, %arg4: memref<128x128xf32, #tpu.memory_space<vmem>>, %arg5: memref<1x128xf32, #tpu.memory_space<vmem>>, %arg6: memref<8x128xf32, #tpu.memory_space<vmem>>) attributes {dimension_semantics = [#tpu.dimension_semantics<parallel>], iteration_bounds = array<i64: 1>, scalar_prefetch = 0 : i64, scratch_operands = 0 : i64, tpu.core_type = #tpu.core_type<tc>, window_params = [{transform_indices = @transform_0, window_bounds = array<i64: 8, 16>}, {pipeline_mode = #tpu.pipeline_mode<synchronous>, transform_indices = @transform_1, window_bounds = array<i64: 16, 128>}, {pipeline_mode = #tpu.pipeline_mode<synchronous>, transform_indices = @transform_2, window_bounds = array<i64: 1, 128>}, {pipeline_mode = #tpu.pipeline_mode<synchronous>, transform_indices = @transform_3, window_bounds = array<i64: 128, 128>}, {pipeline_mode = #tpu.pipeline_mode<synchronous>, transform_indices = @transform_4, window_bounds = array<i64: 1, 128>}, {transform_indices = @transform_5, window_bounds = array<i64: 8, 128>}]} {
    %c0 = arith.constant 0 : index
    %c0_0 = arith.constant 0 : index
    %0 = vector.load %arg1[%c0, %c0_0] : memref<8x16xf32, #tpu.memory_space<vmem>>, vector<8x16xf32>
    %c0_1 = arith.constant 0 : index
    %c0_2 = arith.constant 0 : index
    %1 = vector.load %arg2[%c0_1, %c0_2] : memref<16x128xf32, #tpu.memory_space<vmem>>, vector<16x128xf32>
    %cst = arith.constant dense<0.000000e+00> : vector<8x128xf32>
    %2 = tpu.matmul %0, %1, %cst {dimension_numbers = #tpu.dot_dimension_numbers<[1], [0], [0], [1], [0, 0, 1, 1], [], []>} : vector<8x16xf32>, vector<16x128xf32>, vector<8x128xf32> -> vector<8x128xf32>
    %c0_3 = arith.constant 0 : index
    %c0_4 = arith.constant 0 : index
    %3 = vector.load %arg3[%c0_3, %c0_4] : memref<1x128xf32, #tpu.memory_space<vmem>>, vector<1x128xf32>
    %4 = vector.broadcast %3 : vector<1x128xf32> to vector<8x128xf32>
    %5 = arith.addf %2, %4 : vector<8x128xf32>
    %6 = math.tanh %5 : vector<8x128xf32>
    %c0_5 = arith.constant 0 : index
    %c0_6 = arith.constant 0 : index
    %7 = vector.load %arg4[%c0_5, %c0_6] : memref<128x128xf32, #tpu.memory_space<vmem>>, vector<128x128xf32>
    %cst_7 = arith.constant dense<0.000000e+00> : vector<8x128xf32>
    %8 = tpu.matmul %6, %7, %cst_7 {dimension_numbers = #tpu.dot_dimension_numbers<[1], [0], [0], [1], [0, 0, 1, 1], [], []>} : vector<8x128xf32>, vector<128x128xf32>, vector<8x128xf32> -> vector<8x128xf32>
    %c0_8 = arith.constant 0 : index
    %c0_9 = arith.constant 0 : index
    %9 = vector.load %arg5[%c0_8, %c0_9] : memref<1x128xf32, #tpu.memory_space<vmem>>, vector<1x128xf32>
    %10 = vector.broadcast %9 : vector<1x128xf32> to vector<8x128xf32>
    %11 = arith.addf %8, %10 : vector<8x128xf32>
    %12 = math.tanh %11 : vector<8x128xf32>
    %c0_10 = arith.constant 0 : index
    %c0_11 = arith.constant 0 : index
    %13 = vector.load %arg6[%c0_10, %c0_11] : memref<8x128xf32, #tpu.memory_space<vmem>>, vector<8x128xf32>
    tpu.vector_store %arg6[%c0_10, %c0_11], %12 {strides = array<i32>} : memref<8x128xf32, #tpu.memory_space<vmem>>, vector<8x128xf32>,
    return
  }
  func.func @transform_0(%arg0: i32) -> (i32, i32) {
    %c0_i32 = arith.constant 0 : i32
    %c0_i32_0 = arith.constant 0 : i32
    return %arg0, %c0_i32 : i32, i32
  }
  func.func @transform_1(%arg0: i32) -> (i32, i32) {
    %c0_i32 = arith.constant 0 : i32
    %c0_i32_0 = arith.constant 0 : i32
    %c0_i32_1 = arith.constant 0 : i32
    return %c0_i32, %c0_i32_0 : i32, i32
  }
  func.func @transform_2(%arg0: i32) -> (i32, i32) {
    %c0_i32 = arith.constant 0 : i32
    %c0_i32_0 = arith.constant 0 : i32
    %c0_i32_1 = arith.constant 0 : i32
    return %c0_i32, %c0_i32_0 : i32, i32
  }
  func.func @transform_3(%arg0: i32) -> (i32, i32) {
    %c0_i32 = arith.constant 0 : i32
    %c0_i32_0 = arith.constant 0 : i32
    %c0_i32_1 = arith.constant 0 : i32
    return %c0_i32, %c0_i32_0 : i32, i32
  }
  func.func @transform_4(%arg0: i32) -> (i32, i32) {
    %c0_i32 = arith.constant 0 : i32
    %c0_i32_0 = arith.constant 0 : i32
    %c0_i32_1 = arith.constant 0 : i32
    return %c0_i32, %c0_i32_0 : i32, i32
  }
  func.func @transform_5(%arg0: i32) -> (i32, i32) {
    %c0_i32 = arith.constant 0 : i32
    %c0_i32_0 = arith.constant 0 : i32
    return %arg0, %c0_i32 : i32, i32
  }
}

</mosaic_0001>

<bundles_post_ra>
// kernel: tpu_custom_call.1
= control target key start
LH: loop header
LB: loop body
LE: loop exit
PB: predicated region body
PF: predicated region fallthrough
CT: control target
= control target key end

     0   :  { %10 = vsyncpa [#allocation3], 0  ;;  %s554_s0 = inlined_call_operand.hbm [shape: f32[8,16], index: 0, kind: input, shape index: {}]   ;;  %s555_s1 = inlined_call_operand.hbm [shape: f32[16,128], index: 1, kind: input, shape index: {}]   ;;  %s556_s2 = inlined_call_operand.vmem [shape: f32[1,128], index: 2, kind: input, shape index: {}]   ;;  %s557_s3 = inlined_call_operand.hbm [shape: f32[128,128], index: 3, kind: input, shape index: {}]   ;;  %s558_s4 = inlined_call_operand.vmem [shape: f32[1,128], index: 4, kind: input, shape index: {}]   ;;  %s559_s5 = inlined_call_operand.hbm [shape: f32[8,128], index: 5, kind: output, shape index: {}]  }
   0x1   :  { %11 = vsyncpa [#allocation6], 0 }
   0x2   :  { %12 = vsyncpa [#allocation4], 0  ;;  %s455_s18 = smov [#allocation5]   ;;  %s361_s22 = scalar_lea.hbm %s555_s1, 256 }
   0x3   :  { %s28_s19 = sshll.u32 %s455_s18, 4  ;;  %p362_p0 = scmp.ne.s32.totalorder %s555_s1, %s361_s22  ;;  %s29_s19 = int_to_ptr.vmem [resolvable:$true] %s28_s19 }
   0x4   :  { %p365_p1 = scmp.lt.u32.totalorder %s361_s22, %s555_s1 }
   0x6   :  { %p367_p2 = pnand %p365_p1, %p362_p0 }
   0x8   :  { %370 = shalt.err (!%p367_p2)
}
   0x9   :  { %s371_s27 = scalar_lea.vmem %s29_s19, 256  ;;  %p376_p4 = scmp.lt.s32.totalorder %s29_s19, %s29_s19 }
   0xa   :  { %p372_p3 = scmp.ne.s32.totalorder %s29_s19, %s371_s27  ;;  %p377_p5 = scmp.lt.s32.totalorder %s371_s27, %s371_s27 }
   0xc   :  { %p378_p6 = por %p377_p5, %p376_p4 }
   0xe   :  { %p379_p7 = pnand %p378_p6, %p372_p3 }
  0x10   :  { %382 = shalt.err (!%p379_p7)
}
  0x11   :  { %s456_s28 = smov 128   ;;  %s457_s29 = smov 8  }
  0x12   :  { %34 = dma.hbm_to_vmem [thread:$0]  %s555_s1, 256, %s29_s19, [#allocation6], %s456_s28, %s456_s28, %s457_s29  }
  0x13   :  { %s458_s7 = smov [#allocation2]   ;;  %s459_s9 = smov [#allocation7]  }
  0x14   :  { %s19_s8 = sshll.u32 %s458_s7, 4  ;;  %s42_s10 = sshll.u32 %s459_s9, 4  ;;  %s20_s8 = int_to_ptr.vmem [resolvable:$true] %s19_s8  ;;  %s43_s10 = int_to_ptr.vmem [resolvable:$true] %s42_s10 }
  0x15   :  { %s383_s13 = scalar_lea.hbm %s554_s0, 128 }
  0x16   :  { %p384_p8 = scmp.ne.s32.totalorder %s554_s0, %s383_s13  ;;  %p387_p9 = scmp.lt.u32.totalorder %s383_s13, %s554_s0 }
  0x18   :  { %p389_p10 = pnand %p387_p9, %p384_p8 }
  0x1a   :  { %392 = shalt.err (!%p389_p10)
}
  0x1b   :  { %s393_s1 = scalar_lea.vmem %s20_s8, 128  ;;  %p398_p12 = scmp.lt.s32.totalorder %s20_s8, %s20_s8 }
  0x1c   :  { %p394_p11 = scmp.ne.s32.totalorder %s20_s8, %s393_s1  ;;  %p399_p13 = scmp.lt.s32.totalorder %s393_s1, %s393_s1 }
  0x1e   :  { %p400_p0 = por %p399_p13, %p398_p12 }
  0x20   :  { %p401_p1 = pnand %p400_p0, %p394_p11 }
  0x22   :  { %404 = shalt.err (!%p401_p1)
}
  0x23   :  { %22 = dma.hbm_to_vmem [thread:$0]  %s554_s0, 128, %s20_s8, [#allocation3]  }
  0x24   :  { %s405_s22 = scalar_lea.hbm %s557_s3, 2048 }
  0x25   :  { %p406_p2 = scmp.ne.s32.totalorder %s557_s3, %s405_s22  ;;  %p409_p3 = scmp.lt.u32.totalorder %s405_s22, %s557_s3 }
  0x27   :  { %p411_p4 = pnand %p409_p3, %p406_p2 }
  0x29   :  { %414 = shalt.err (!%p411_p4)
}
  0x2a   :  { %s415_s27 = scalar_lea.vmem %s43_s10, 2048  ;;  %p420_p6 = scmp.lt.s32.totalorder %s43_s10, %s43_s10 }
  0x2b   :  { %p416_p5 = scmp.ne.s32.totalorder %s43_s10, %s415_s27  ;;  %p421_p7 = scmp.lt.s32.totalorder %s415_s27, %s415_s27 }
  0x2d   :  { %p422_p8 = por %p421_p7, %p420_p6 }
  0x2f   :  { %p423_p9 = pnand %p422_p8, %p416_p5 }
  0x31   :  { %426 = shalt.err (!%p423_p9)
}
  0x32   :  { %48 = dma.hbm_to_vmem [thread:$0]  %s557_s3, 2048, %s43_s10, [#allocation6], %s456_s28, %s456_s28, %s457_s29  }
  0x33   :  { %449 = dma.done.wait [#allocation3], 128  }
  0x34   :  { %450 = vsyncadd [#allocation3], 4294967168 }
  0x35   :  { %451 = dma.done.wait [#allocation6], 2304  }
  0x36   :  { %452 = vsyncadd [#allocation6], 4294964992  ;;  %v460_v0 = vmov 0.0|0.0   ;;  %vm461_vm0 = vmmov 0   ;;  %v462_v1 = vmov 0.0   ;;  %v61_v2 = vld [vmem:[#allocation5] sm:$0xff] }
  0x37   :  { %321 = vmatprep.subr.bf16.mxu0 %v460_v0  ;;  %283 = vmatprep.mubr.msk.f32.mxu0 %vm461_vm0, %v462_v1  ;;  %v62_v3 = vld [vmem:[#allocation5 + $0x8] sm:$0xff]  ;;  %v145_v5 = vld [vmem:[#allocation7] sm:$0xff]  ;;  %v146_v6 = vld [vmem:[#allocation7 + $0x8] sm:$0xff]  ;;  %vm70_vm1 = vcmask 130048   ;;  %s463_s7 = smov [#allocation8]  }
  0x38   :  { %324 = vmatprep.subr.bf16.mxu1 %v460_v0  ;;  %318 = vmatprep.mubr.msk.f32.mxu1 %vm461_vm0, %v462_v1  ;;  %v322_v4 = vpack.c.bf16 %v62_v3, %v61_v2  ;;  %v147_v7 = vld [vmem:[#allocation7 + $0x10] sm:$0xff]  ;;  %v325_v8 = vpack.c.bf16 %v146_v6, %v145_v5  ;;  %v148_v9 = vld [vmem:[#allocation7 + $0x18] sm:$0xff]  ;;  %v60_v10 = vld [vmem:[#allocation2] sm:$0xff]  ;;  %s246_s8 = sshll.u32 %s463_s7, 4  ;;  %s247_s8 = int_to_ptr.vmem [resolvable:$true] %s246_s8 }
  0x39   :  { %v328_v11 = vpack.c.bf16 %v148_v9, %v147_v7  ;;  %v149_v12 = vld [vmem:[#allocation7 + $0x20] sm:$0xff]  ;;  %v150_v13 = vld [vmem:[#allocation7 + $0x28] sm:$0xff]  ;;  %v151_v15 = vld [vmem:[#allocation7 + $0x30] sm:$0xff]  ;;  %p432_p11 = scmp.lt.s32.totalorder %s247_s8, %s247_s8 }
  0x3a   :  { %323 = vmatpush3.bf16.msra.mxu0 %v322_v4  ;;  %326 = vmatpush3.bf16.msra.mxu1 %v325_v8  ;;  %v331_v14 = vpack.c.bf16 %v150_v13, %v149_v12  ;;  %v152_v16 = vld [vmem:[#allocation7 + $0x38] sm:$0xff]  ;;  %v153_v18 = vld [vmem:[#allocation7 + $0x40] sm:$0xff]  ;;  %v154_v19 = vld [vmem:[#allocation7 + $0x48] sm:$0xff] }
  0x3b   :  { %327 = vmatprep.subr.bf16.mxu1 %v460_v0  ;;  %v334_v17 = vpack.c.bf16 %v152_v16, %v151_v15  ;;  %v337_v20 = vpack.c.bf16 %v154_v19, %v153_v18  ;;  %v155_v21 = vld [vmem:[#allocation7 + $0x50] sm:$0xff]  ;;  %v156_v22 = vld [vmem:[#allocation7 + $0x58] sm:$0xff]  ;;  %v157_v24 = vld [vmem:[#allocation7 + $0x60] sm:$0xff] }
  0x3c   :  { %v340_v23 = vpack.c.bf16 %v156_v22, %v155_v21  ;;  %v158_v25 = vld [vmem:[#allocation7 + $0x68] sm:$0xff]  ;;  %v159_v27 = vld [vmem:[#allocation7 + $0x70] sm:$0xff]  ;;  %v160_v28 = vld [vmem:[#allocation7 + $0x78] sm:$0xff] }
  0x3d   :  { %284 = vmatmul.mubr.msk.f32.vlgmr.msra.gmra.mrb[0].mxu0 %vm70_vm1, %v60_v10  ;;  %v343_v26 = vpack.c.bf16 %v158_v25, %v157_v24  ;;  %v346_v29 = vpack.c.bf16 %v160_v28, %v159_v27  ;;  %v256_v30 = vld [vmem:[%s556_s2] ss:$0 sm:$0xff]  ;;  %s427_s2 = scalar_lea.vmem %s247_s8, 128 }
  0x3e   :  { %329 = vmatpush3.bf16.msra.mxu1 %v328_v11  ;;  %v258_v35 = vld [vmem:[%s558_s4] ss:$0 sm:$0xff]  ;;  %p428_p10 = scmp.ne.s32.totalorder %s247_s8, %s427_s2  ;;  %p433_p12 = scmp.lt.s32.totalorder %s427_s2, %s427_s2 }
  0x3f   :  { %330 = vmatprep.subr.bf16.mxu1 %v460_v0 }
  0x40   :  { %p434_p13 = por %p433_p12, %p432_p11 }
  0x42   :  { %332 = vmatpush3.bf16.msra.mxu1 %v331_v14  ;;  %p435_p0 = pnand %p434_p13, %p428_p10 }
  0x43   :  { %333 = vmatprep.subr.bf16.mxu1 %v460_v0 }
  0x46   :  { %335 = vmatpush3.bf16.msra.mxu1 %v334_v17 }
  0x47   :  { %336 = vmatprep.subr.bf16.mxu1 %v460_v0 }
  0x4a   :  { %338 = vmatpush3.bf16.msra.mxu1 %v337_v20 }
  0x4b   :  { %339 = vmatprep.subr.bf16.mxu1 %v460_v0 }
  0x4e   :  { %341 = vmatpush3.bf16.msra.mxu1 %v340_v23 }
  0x4f   :  { %342 = vmatprep.subr.bf16.mxu1 %v460_v0 }
  0x52   :  { %344 = vmatpush3.bf16.msra.mxu1 %v343_v26 }
  0x53   :  { %345 = vmatprep.subr.bf16.mxu1 %v460_v0 }
  0x56   :  { %347 = vmatpush3.bf16.msra.mxu1 %v346_v29 }
 0x110   :  { %v140_v31 = vpop.f32.mrb[0].mxu0 }
 0x111   :  { %v141_v32 = vadd.f32 %v256_v30, %v140_v31  ;;  %v285_v33 = vpop.f32.mrb[1].mxu0 }
 0x113   :  { %357 = vtanh.f32 %v141_v32 }
 0x11d   :  { %v358_v34 = vpop.eup %357 }
 0x11e   :  { %319 = vmatmul.mubr.f32.vlgmr.msra.gmra.mrb[0].mxu1 %v358_v34 }
 0x1f1   :  { %v234_v36 = vpop.f32.mrb[0].mxu1 }
 0x1f2   :  { %v235_v37 = vadd.f32 %v258_v35, %v234_v36  ;;  %v320_v38 = vpop.f32.mrb[1].mxu1 }
 0x1f4   :  { %359 = vtanh.f32 %v235_v37 }
 0x1fe   :  { %v360_v39 = vpop.eup %359 }
 0x1ff   :  { %239 = vst [vmem:[#allocation8] sm:$0xff] %v360_v39 }
 0x200   :  { %438 = shalt.err (!%p435_p0)
}
 0x201   :  { %s439_s4 = scalar_lea.hbm %s559_s5, 128 }
 0x202   :  { %p440_p1 = scmp.ne.s32.totalorder %s559_s5, %s439_s4  ;;  %p443_p2 = scmp.lt.u32.totalorder %s439_s4, %s559_s5 }
 0x204   :  { %p445_p3 = pnand %p443_p2, %p440_p1 }
 0x206   :  { %448 = shalt.err (!%p445_p3)
}
 0x207   :  { %249 = dma.vmem_to_hbm [thread:$0]  %s247_s8, 128, %s559_s5, [#allocation4]  }
 0x208   :  { %453 = dma.done.wait [#allocation4], 128  }
 0x209   :  { %454 = vsyncadd [#allocation4], 4294967168 }
 0x20a   :  { %253 = vsyncpa [#allocation3], 1 }
 0x20b   :  { %254 = vsyncpa [#allocation6], 1 }
 0x20c   :  { %255 = vsyncpa [#allocation4], 1 }

</bundles_post_ra>
